<compile_context>
chip_gen: v7x
topology: tpu7x:2x2x1
jax: 0.10.0
libtpu: 0.0.40
codegen_flags: <defaults>
</compile_context>

<pallas_src>
import functools
import math

import jax
import jax.numpy as jnp
from jax.experimental import pallas as pl
from jax.experimental.pallas import tpu as pltpu


def _xl_layer_kernel(
    src_ref,    # (1, S, D)  f32
    wqkv_ref,   # (D, 3D)    bf16  packed in_proj weight, pre-T, Q-scale folded
    wo_ref,     # (D, D)     bf16  out_proj weight, pre-T
    w1_ref,     # (D, F)     bf16  linear1 weight, pre-T
    w2_ref,     # (F, D)     bf16  linear2 weight, pre-T
    vecs_ref,   # (8, W)     f32   packed biases / LN params (row layout in _prep_params)
    out_ref,    # (1, S, D)  f32
    *,
    n_heads: int,
):
    x = src_ref[0]                       # (S, D) f32
    S, D = x.shape
    F = w1_ref.shape[1]
    hd = D // n_heads
    eps = 1e-5

    # Packed per-feature vectors (single small f32 load, then value slices).
    vecs = vecs_ref[...]                 # (8, W)
    bqkv = vecs[0:1, :3 * D]             # in_proj bias (Q-scale folded)
    bo   = vecs[1:2, :D]                 # out_proj bias
    b1   = vecs[2:3, :F]                 # linear1 bias
    b2   = vecs[3:4, :D]                 # linear2 bias
    g1   = vecs[4:5, :D]                 # norm1 gamma
    be1  = vecs[5:6, :D]                 # norm1 beta
    g2   = vecs[6:7, :D]                 # norm2 gamma
    be2  = vecs[7:8, :D]                 # norm2 beta

    # ---- packed QKV projection: plain (S,D)x(D,3D); scale already folded into Q ----
    qkv = jnp.dot(x.astype(jnp.bfloat16), wqkv_ref[...],
                  preferred_element_type=jnp.float32) + bqkv        # (S, 3D) f32

    # Hoisted bf16 casts: three slab casts, sliced per head inside the loop.
    q = qkv[:, :D].astype(jnp.bfloat16)
    k = qkv[:, D:2 * D].astype(jnp.bfloat16)
    v = qkv[:, 2 * D:].astype(jnp.bfloat16)

    # ---- multi-head attention (static unroll over the small head count) ----
    heads = []
    for h in range(n_heads):
        lo = h * hd
        qh = q[:, lo:lo + hd]                                        # (S, hd) bf16
        kh = k[:, lo:lo + hd]
        vh = v[:, lo:lo + hd]
        s = jnp.einsum("qd,kd->qk", qh, kh,
                       preferred_element_type=jnp.float32)           # (S, S) f32
        m = jnp.max(s, axis=-1, keepdims=True)
        p = jnp.exp(s - m)
        p = p * pl.reciprocal(jnp.sum(p, axis=-1, keepdims=True), approx=True)
        heads.append(jnp.dot(p.astype(jnp.bfloat16), vh,
                             preferred_element_type=jnp.float32))     # (S, hd) f32

    # Concatenate heads (f32, lane-native layout) -> one (S,D)x(D,D) out-proj matmul.
    ctx = jnp.concatenate(heads, axis=-1).astype(jnp.bfloat16)        # (S, D) bf16
    attn_out = jnp.dot(ctx, wo_ref[...],
                       preferred_element_type=jnp.float32) + bo       # (S, D) f32

    # ---- residual + LayerNorm 1 (f32) ----
    x1 = x + attn_out
    mu = jnp.mean(x1, axis=-1, keepdims=True)
    var = jnp.mean((x1 - mu) ** 2, axis=-1, keepdims=True)
    x1 = (x1 - mu) * jax.lax.rsqrt(var + eps) * g1 + be1

    # ---- feed-forward: linear2(relu(linear1(x1))) ----
    h1 = jnp.dot(x1.astype(jnp.bfloat16), w1_ref[...],
                 preferred_element_type=jnp.float32) + b1
    h1 = jnp.maximum(h1, 0.0)
    ff = jnp.dot(h1.astype(jnp.bfloat16), w2_ref[...],
                 preferred_element_type=jnp.float32) + b2

    # ---- residual + LayerNorm 2 (f32) ----
    x2 = x1 + ff
    mu2 = jnp.mean(x2, axis=-1, keepdims=True)
    var2 = jnp.mean((x2 - mu2) ** 2, axis=-1, keepdims=True)
    out_ref[0] = (x2 - mu2) * jax.lax.rsqrt(var2 + eps) * g2 + be2


def _prep_params(params, n_heads):
    """Host-side, one-time layout prep: pre-transpose weights, fold the attention
    scale into the Q columns, cast matmul weights to bf16, and pack all small
    per-feature vectors into a single (8, W) f32 slab."""
    D = params["wo"].shape[0]
    F = params["w1"].shape[0]
    hd = D // n_heads
    scale = 1.0 / math.sqrt(hd)

    wqkv_t = jnp.transpose(params["wqkv"])                 # (D, 3D)
    wqkv_t = wqkv_t.at[:, :D].multiply(scale)              # fold 1/sqrt(hd) into Q
    bqkv = params["bqkv"].at[:, :D].multiply(scale)        # (1, 3D)

    W = max(3 * D, F)

    def pad(v):                                            # (1, n) -> (1, W)
        return jnp.pad(v.astype(jnp.float32), ((0, 0), (0, W - v.shape[1])))

    vecs = jnp.concatenate([
        pad(bqkv),            # row 0: in_proj bias (scale folded)
        pad(params["bo"]),    # row 1: out_proj bias
        pad(params["b1"]),    # row 2: linear1 bias
        pad(params["b2"]),    # row 3: linear2 bias
        pad(params["g1"]),    # row 4: norm1 gamma
        pad(params["be1"]),   # row 5: norm1 beta
        pad(params["g2"]),    # row 6: norm2 gamma
        pad(params["be2"]),   # row 7: norm2 beta
    ], axis=0)                                             # (8, W) f32

    return {
        "wqkv_t": wqkv_t.astype(jnp.bfloat16),
        "wo_t": jnp.transpose(params["wo"]).astype(jnp.bfloat16),   # (D, D)
        "w1_t": jnp.transpose(params["w1"]).astype(jnp.bfloat16),   # (D, F)
        "w2_t": jnp.transpose(params["w2"]).astype(jnp.bfloat16),   # (F, D)
        "vecs": vecs,
    }


def _vmem_limit_bytes():
    """Derive the scoped-VMEM budget from the actual chip instead of hard-coding:
    ~80% of physical (leaves Mosaic scratch headroom), capped at 110 MiB.
    -> ~51 MiB on v7x (64 MiB physical), ~102 MiB on v5e/v6e (128 MiB physical)."""
    try:
        cap = int(pltpu.get_tpu_info().vmem_capacity_bytes)
    except Exception:
        cap = 64 * 1024 * 1024
    return int(min(0.8 * cap, 110 * 1024 * 1024))


def transformer_xl_encoder_layer(src, params, *, n_heads):
    """src: (seq_len, batch, d_model) float32 -> same shape."""
    S, B, D = src.shape
    F = params["w1"].shape[0]
    kp = _prep_params(params, n_heads)
    W = kp["vecs"].shape[1]

    # Grid iterates over batch (parallel -> shards across v7x's 2 TensorCores);
    # each grid step sees one contiguous (S, D) slab resident in VMEM.
    src_b = jnp.transpose(src, (1, 0, 2))  # (B, S, D)

    def resident(shape):
        # Grid-invariant operand: constant index map => fetched once, no re-DMA.
        return pl.BlockSpec(shape, lambda b: (0,) * len(shape))

    out = pl.pallas_call(
        functools.partial(_xl_layer_kernel, n_heads=n_heads),
        out_shape=jax.ShapeDtypeStruct((B, S, D), jnp.float32),
        grid=(B,),
        in_specs=[
            pl.BlockSpec((1, S, D), lambda b: (b, 0, 0)),  # src
            resident((D, 3 * D)),   # packed in_proj weight (pre-T, scale-folded, bf16)
            resident((D, D)),       # out_proj weight (pre-T, bf16)
            resident((D, F)),       # linear1 weight (pre-T, bf16)
            resident((F, D)),       # linear2 weight (pre-T, bf16)
            resident((8, W)),       # packed biases / LN params (f32)
        ],
        out_specs=pl.BlockSpec((1, S, D), lambda b: (b, 0, 0)),
        compiler_params=pltpu.CompilerParams(
            dimension_semantics=("parallel",),
            vmem_limit_bytes=_vmem_limit_bytes(),
        ),
    )(src_b, kp["wqkv_t"], kp["wo_t"], kp["w1_t"], kp["w2_t"], kp["vecs"])
    return jnp.transpose(out, (1, 0, 2))  # back to (S, B, D)


def _reference(src, params, *, n_heads):
    """Pure-JAX f32 reference replicating the PyTorch forward (eval mode)."""
    S, B, D = src.shape
    hd = D // n_heads
    scale = 1.0 / math.sqrt(hd)
    x = src  # (S, B, D)

    qkv = jnp.einsum("sbd,ed->sbe", x, params["wqkv"]) + params["bqkv"][0]
    q, k, v = qkv[..., :D], qkv[..., D:2 * D], qkv[..., 2 * D:]

    def split_heads(t):  # (S, B, D) -> (B, H, S, hd)
        return t.reshape(S, B, n_heads, hd).transpose(1, 2, 0, 3)

    qh, kh, vh = split_heads(q) * scale, split_heads(k), split_heads(v)
    scores = jnp.einsum("bhqd,bhkd->bhqk", qh, kh)
    p = jax.nn.softmax(scores, axis=-1)
    o = jnp.einsum("bhqk,bhkd->bhqd", p, vh)          # (B, H, S, hd)
    o = o.transpose(2, 0, 1, 3).reshape(S, B, D)
    attn_out = jnp.einsum("sbd,ed->sbe", o, params["wo"]) + params["bo"][0]

    def ln(t, g, b):
        mu = t.mean(-1, keepdims=True)
        var = ((t - mu) ** 2).mean(-1, keepdims=True)
        return (t - mu) / jnp.sqrt(var + 1e-5) * g[0] + b[0]

    x1 = ln(x + attn_out, params["g1"], params["be1"])
    h = jax.nn.relu(jnp.einsum("sbd,fd->sbf", x1, params["w1"]) + params["b1"][0])
    ff = jnp.einsum("sbf,df->sbd", h, params["w2"]) + params["b2"][0]
    return ln(x1 + ff, params["g2"], params["be2"])


def init_params(key, d_model, n_heads, d_ff):
    ks = jax.random.split(key, 6)
    std = 0.02
    return {
        "wqkv": jax.random.normal(ks[0], (3 * d_model, d_model), jnp.float32) * std,
        "bqkv": jnp.zeros((1, 3 * d_model), jnp.float32),
        "wo": jax.random.normal(ks[1], (d_model, d_model), jnp.float32) * std,
        "bo": jnp.zeros((1, d_model), jnp.float32),
        "w1": jax.random.normal(ks[2], (d_ff, d_model), jnp.float32) * std,
        "b1": jnp.zeros((1, d_ff), jnp.float32),
        "w2": jax.random.normal(ks[3], (d_model, d_ff), jnp.float32) * std,
        "b2": jnp.zeros((1, d_model), jnp.float32),
        "g1": jnp.ones((1, d_model), jnp.float32),
        "be1": jnp.zeros((1, d_model), jnp.float32),
        "g2": jnp.ones((1, d_model), jnp.float32),
        "be2": jnp.zeros((1, d_model), jnp.float32),
    }


if __name__ == "__main__":
    d_model, n_heads, d_ff = 32, 4, 64
    seq_len, batch = 8, 2

    key = jax.random.PRNGKey(0)
    k_src, k_par = jax.random.split(key)
    src = jax.random.normal(k_src, (seq_len, batch, d_model), jnp.float32)
    params = init_params(k_par, d_model, n_heads, d_ff)

    out = transformer_xl_encoder_layer(src, params, n_heads=n_heads)
    out = jax.block_until_ready(out)

    ref = _reference(src, params, n_heads=n_heads)
    assert out.shape == (seq_len, batch, d_model)
    # bf16 matmuls + approx reciprocal vs f32 reference -> slightly looser tolerance
    assert jnp.allclose(out, ref, atol=2e-2, rtol=2e-2), float(jnp.max(jnp.abs(out - ref)))

    print("KERNEL_OK")
</pallas_src>

<mosaic_0001>
module attributes {stable_mosaic.version = 11 : i64} {
  func.func @_xl_layer_kernel(%arg0: i32, %arg1: memref<1x8x32xf32, #tpu.memory_space<vmem>>, %arg2: memref<32x96xbf16, #tpu.memory_space<vmem>>, %arg3: memref<32x32xbf16, #tpu.memory_space<vmem>>, %arg4: memref<32x64xbf16, #tpu.memory_space<vmem>>, %arg5: memref<64x32xbf16, #tpu.memory_space<vmem>>, %arg6: memref<8x96xf32, #tpu.memory_space<vmem>>, %arg7: memref<1x8x32xf32, #tpu.memory_space<vmem>>) attributes {dimension_semantics = [#tpu.dimension_semantics<parallel>], iteration_bounds = array<i64: 2>, scalar_prefetch = 0 : i64, scratch_operands = 0 : i64, tpu.core_type = #tpu.core_type<tc>, window_params = [{transform_indices = @transform_0, window_bounds = array<i64: 1, 8, 32>}, {pipeline_mode = #tpu.pipeline_mode<synchronous>, transform_indices = @transform_1, window_bounds = array<i64: 32, 96>}, {pipeline_mode = #tpu.pipeline_mode<synchronous>, transform_indices = @transform_2, window_bounds = array<i64: 32, 32>}, {pipeline_mode = #tpu.pipeline_mode<synchronous>, transform_indices = @transform_3, window_bounds = array<i64: 32, 64>}, {pipeline_mode = #tpu.pipeline_mode<synchronous>, transform_indices = @transform_4, window_bounds = array<i64: 64, 32>}, {pipeline_mode = #tpu.pipeline_mode<synchronous>, transform_indices = @transform_5, window_bounds = array<i64: 8, 96>}, {transform_indices = @transform_6, window_bounds = array<i64: 1, 8, 32>}]} {
    %c0 = arith.constant 0 : index
    %c0_0 = arith.constant 0 : index
    %c0_1 = arith.constant 0 : index
    %0 = vector.load %arg1[%c0, %c0_0, %c0_1] : memref<1x8x32xf32, #tpu.memory_space<vmem>>, vector<1x8x32xf32>
    %1 = vector.shape_cast %0 : vector<1x8x32xf32> to vector<8x32xf32>
    %c0_2 = arith.constant 0 : index
    %c0_3 = arith.constant 0 : index
    %2 = vector.load %arg6[%c0_2, %c0_3] : memref<8x96xf32, #tpu.memory_space<vmem>>, vector<8x96xf32>
    %3 = vector.extract_strided_slice %2 {offsets = [0, 0], sizes = [1, 96], strides = [1, 1]} : vector<8x96xf32> to vector<1x96xf32>
    %4 = vector.extract_strided_slice %2 {offsets = [1, 0], sizes = [1, 32], strides = [1, 1]} : vector<8x96xf32> to vector<1x32xf32>
    %5 = vector.extract_strided_slice %2 {offsets = [2, 0], sizes = [1, 64], strides = [1, 1]} : vector<8x96xf32> to vector<1x64xf32>
    %6 = vector.extract_strided_slice %2 {offsets = [3, 0], sizes = [1, 32], strides = [1, 1]} : vector<8x96xf32> to vector<1x32xf32>
    %7 = vector.extract_strided_slice %2 {offsets = [4, 0], sizes = [1, 32], strides = [1, 1]} : vector<8x96xf32> to vector<1x32xf32>
    %8 = vector.extract_strided_slice %2 {offsets = [5, 0], sizes = [1, 32], strides = [1, 1]} : vector<8x96xf32> to vector<1x32xf32>
    %9 = vector.extract_strided_slice %2 {offsets = [6, 0], sizes = [1, 32], strides = [1, 1]} : vector<8x96xf32> to vector<1x32xf32>
    %10 = vector.extract_strided_slice %2 {offsets = [7, 0], sizes = [1, 32], strides = [1, 1]} : vector<8x96xf32> to vector<1x32xf32>
    %11 = arith.truncf %1 : vector<8x32xf32> to vector<8x32xbf16>
    %c0_4 = arith.constant 0 : index
    %c0_5 = arith.constant 0 : index
    %12 = vector.load %arg2[%c0_4, %c0_5] : memref<32x96xbf16, #tpu.memory_space<vmem>>, vector<32x96xbf16>
    %cst = arith.constant dense<0.000000e+00> : vector<8x96xf32>
    %13 = tpu.matmul %11, %12, %cst {dimension_numbers = #tpu.dot_dimension_numbers<[1], [0], [0], [1], [0, 0, 1, 1], [], []>} : vector<8x32xbf16>, vector<32x96xbf16>, vector<8x96xf32> -> vector<8x96xf32>
    %14 = vector.broadcast %3 : vector<1x96xf32> to vector<8x96xf32>
    %15 = arith.addf %13, %14 : vector<8x96xf32>
    %16 = vector.extract_strided_slice %15 {offsets = [0, 0], sizes = [8, 32], strides = [1, 1]} : vector<8x96xf32> to vector<8x32xf32>
    %17 = arith.truncf %16 : vector<8x32xf32> to vector<8x32xbf16>
    %18 = vector.extract_strided_slice %15 {offsets = [0, 32], sizes = [8, 32], strides = [1, 1]} : vector<8x96xf32> to vector<8x32xf32>
    %19 = arith.truncf %18 : vector<8x32xf32> to vector<8x32xbf16>
    %20 = vector.extract_strided_slice %15 {offsets = [0, 64], sizes = [8, 32], strides = [1, 1]} : vector<8x96xf32> to vector<8x32xf32>
    %21 = arith.truncf %20 : vector<8x32xf32> to vector<8x32xbf16>
    %22 = vector.extract_strided_slice %17 {offsets = [0, 0], sizes = [8, 8], strides = [1, 1]} : vector<8x32xbf16> to vector<8x8xbf16>
    %23 = vector.extract_strided_slice %19 {offsets = [0, 0], sizes = [8, 8], strides = [1, 1]} : vector<8x32xbf16> to vector<8x8xbf16>
    %24 = vector.extract_strided_slice %21 {offsets = [0, 0], sizes = [8, 8], strides = [1, 1]} : vector<8x32xbf16> to vector<8x8xbf16>
    "tpu.trace_start"() <{level = 10 : i32, message = "qd,kd->qk"}> : () -> ()
    %cst_6 = arith.constant dense<0.000000e+00> : vector<8x8xf32>
    %25 = tpu.matmul %22, %23, %cst_6 {dimension_numbers = #tpu.dot_dimension_numbers<[1], [1], [0], [0], [0, 0, 1, 0], [], []>} : vector<8x8xbf16>, vector<8x8xbf16>, vector<8x8xf32> -> vector<8x8xf32>
    "tpu.trace_stop"() : () -> ()
    %cst_7 = arith.constant dense<0xFF800000> : vector<8xf32>
    %26 = vector.multi_reduction <maximumf>, %25, %cst_7 [1] : vector<8x8xf32> to vector<8xf32>
    %27 = vector.shape_cast %26 : vector<8xf32> to vector<8x1xf32>
    %28 = vector.broadcast %27 : vector<8x1xf32> to vector<8x8xf32>
    %29 = arith.subf %25, %28 : vector<8x8xf32>
    %30 = math.exp %29 : vector<8x8xf32>
    %cst_8 = arith.constant dense<0.000000e+00> : vector<8xf32>
    %31 = vector.multi_reduction <add>, %30, %cst_8 [1] : vector<8x8xf32> to vector<8xf32>
    %32 = vector.shape_cast %31 : vector<8xf32> to vector<8x1xf32>
    %33 = tpu.reciprocal %32 {approx = true} : vector<8x1xf32> -> vector<8x1xf32>
    %34 = vector.broadcast %33 : vector<8x1xf32> to vector<8x8xf32>
    %35 = arith.mulf %30, %34 : vector<8x8xf32>
    %36 = arith.truncf %35 : vector<8x8xf32> to vector<8x8xbf16>
    %cst_9 = arith.constant dense<0.000000e+00> : vector<8x8xf32>
    %37 = tpu.matmul %36, %24, %cst_9 {dimension_numbers = #tpu.dot_dimension_numbers<[1], [0], [0], [1], [0, 0, 1, 1], [], []>} : vector<8x8xbf16>, vector<8x8xbf16>, vector<8x8xf32> -> vector<8x8xf32>
    %38 = vector.extract_strided_slice %17 {offsets = [0, 8], sizes = [8, 8], strides = [1, 1]} : vector<8x32xbf16> to vector<8x8xbf16>
    %39 = vector.extract_strided_slice %19 {offsets = [0, 8], sizes = [8, 8], strides = [1, 1]} : vector<8x32xbf16> to vector<8x8xbf16>
    %40 = vector.extract_strided_slice %21 {offsets = [0, 8], sizes = [8, 8], strides = [1, 1]} : vector<8x32xbf16> to vector<8x8xbf16>
    "tpu.trace_start"() <{level = 10 : i32, message = "qd,kd->qk"}> : () -> ()
    %cst_10 = arith.constant dense<0.000000e+00> : vector<8x8xf32>
    %41 = tpu.matmul %38, %39, %cst_10 {dimension_numbers = #tpu.dot_dimension_numbers<[1], [1], [0], [0], [0, 0, 1, 0], [], []>} : vector<8x8xbf16>, vector<8x8xbf16>, vector<8x8xf32> -> vector<8x8xf32>
    "tpu.trace_stop"() : () -> ()
    %cst_11 = arith.constant dense<0xFF800000> : vector<8xf32>
    %42 = vector.multi_reduction <maximumf>, %41, %cst_11 [1] : vector<8x8xf32> to vector<8xf32>
    %43 = vector.shape_cast %42 : vector<8xf32> to vector<8x1xf32>
    %44 = vector.broadcast %43 : vector<8x1xf32> to vector<8x8xf32>
    %45 = arith.subf %41, %44 : vector<8x8xf32>
    %46 = math.exp %45 : vector<8x8xf32>
    %cst_12 = arith.constant dense<0.000000e+00> : vector<8xf32>
    %47 = vector.multi_reduction <add>, %46, %cst_12 [1] : vector<8x8xf32> to vector<8xf32>
    %48 = vector.shape_cast %47 : vector<8xf32> to vector<8x1xf32>
    %49 = tpu.reciprocal %48 {approx = true} : vector<8x1xf32> -> vector<8x1xf32>
    %50 = vector.broadcast %49 : vector<8x1xf32> to vector<8x8xf32>
    %51 = arith.mulf %46, %50 : vector<8x8xf32>
    %52 = arith.truncf %51 : vector<8x8xf32> to vector<8x8xbf16>
    %cst_13 = arith.constant dense<0.000000e+00> : vector<8x8xf32>
    %53 = tpu.matmul %52, %40, %cst_13 {dimension_numbers = #tpu.dot_dimension_numbers<[1], [0], [0], [1], [0, 0, 1, 1], [], []>} : vector<8x8xbf16>, vector<8x8xbf16>, vector<8x8xf32> -> vector<8x8xf32>
    %54 = vector.extract_strided_slice %17 {offsets = [0, 16], sizes = [8, 8], strides = [1, 1]} : vector<8x32xbf16> to vector<8x8xbf16>
    %55 = vector.extract_strided_slice %19 {offsets = [0, 16], sizes = [8, 8], strides = [1, 1]} : vector<8x32xbf16> to vector<8x8xbf16>
    %56 = vector.extract_strided_slice %21 {offsets = [0, 16], sizes = [8, 8], strides = [1, 1]} : vector<8x32xbf16> to vector<8x8xbf16>
    "tpu.trace_start"() <{level = 10 : i32, message = "qd,kd->qk"}> : () -> ()
    %cst_14 = arith.constant dense<0.000000e+00> : vector<8x8xf32>
    %57 = tpu.matmul %54, %55, %cst_14 {dimension_numbers = #tpu.dot_dimension_numbers<[1], [1], [0], [0], [0, 0, 1, 0], [], []>} : vector<8x8xbf16>, vector<8x8xbf16>, vector<8x8xf32> -> vector<8x8xf32>
    "tpu.trace_stop"() : () -> ()
    %cst_15 = arith.constant dense<0xFF800000> : vector<8xf32>
    %58 = vector.multi_reduction <maximumf>, %57, %cst_15 [1] : vector<8x8xf32> to vector<8xf32>
    %59 = vector.shape_cast %58 : vector<8xf32> to vector<8x1xf32>
    %60 = vector.broadcast %59 : vector<8x1xf32> to vector<8x8xf32>
    %61 = arith.subf %57, %60 : vector<8x8xf32>
    %62 = math.exp %61 : vector<8x8xf32>
    %cst_16 = arith.constant dense<0.000000e+00> : vector<8xf32>
    %63 = vector.multi_reduction <add>, %62, %cst_16 [1] : vector<8x8xf32> to vector<8xf32>
    %64 = vector.shape_cast %63 : vector<8xf32> to vector<8x1xf32>
    %65 = tpu.reciprocal %64 {approx = true} : vector<8x1xf32> -> vector<8x1xf32>
    %66 = vector.broadcast %65 : vector<8x1xf32> to vector<8x8xf32>
    %67 = arith.mulf %62, %66 : vector<8x8xf32>
    %68 = arith.truncf %67 : vector<8x8xf32> to vector<8x8xbf16>
    %cst_17 = arith.constant dense<0.000000e+00> : vector<8x8xf32>
    %69 = tpu.matmul %68, %56, %cst_17 {dimension_numbers = #tpu.dot_dimension_numbers<[1], [0], [0], [1], [0, 0, 1, 1], [], []>} : vector<8x8xbf16>, vector<8x8xbf16>, vector<8x8xf32> -> vector<8x8xf32>
    %70 = vector.extract_strided_slice %17 {offsets = [0, 24], sizes = [8, 8], strides = [1, 1]} : vector<8x32xbf16> to vector<8x8xbf16>
    %71 = vector.extract_strided_slice %19 {offsets = [0, 24], sizes = [8, 8], strides = [1, 1]} : vector<8x32xbf16> to vector<8x8xbf16>
    %72 = vector.extract_strided_slice %21 {offsets = [0, 24], sizes = [8, 8], strides = [1, 1]} : vector<8x32xbf16> to vector<8x8xbf16>
    "tpu.trace_start"() <{level = 10 : i32, message = "qd,kd->qk"}> : () -> ()
    %cst_18 = arith.constant dense<0.000000e+00> : vector<8x8xf32>
    %73 = tpu.matmul %70, %71, %cst_18 {dimension_numbers = #tpu.dot_dimension_numbers<[1], [1], [0], [0], [0, 0, 1, 0], [], []>} : vector<8x8xbf16>, vector<8x8xbf16>, vector<8x8xf32> -> vector<8x8xf32>
    "tpu.trace_stop"() : () -> ()
    %cst_19 = arith.constant dense<0xFF800000> : vector<8xf32>
    %74 = vector.multi_reduction <maximumf>, %73, %cst_19 [1] : vector<8x8xf32> to vector<8xf32>
    %75 = vector.shape_cast %74 : vector<8xf32> to vector<8x1xf32>
    %76 = vector.broadcast %75 : vector<8x1xf32> to vector<8x8xf32>
    %77 = arith.subf %73, %76 : vector<8x8xf32>
    %78 = math.exp %77 : vector<8x8xf32>
    %cst_20 = arith.constant dense<0.000000e+00> : vector<8xf32>
    %79 = vector.multi_reduction <add>, %78, %cst_20 [1] : vector<8x8xf32> to vector<8xf32>
    %80 = vector.shape_cast %79 : vector<8xf32> to vector<8x1xf32>
    %81 = tpu.reciprocal %80 {approx = true} : vector<8x1xf32> -> vector<8x1xf32>
    %82 = vector.broadcast %81 : vector<8x1xf32> to vector<8x8xf32>
    %83 = arith.mulf %78, %82 : vector<8x8xf32>
    %84 = arith.truncf %83 : vector<8x8xf32> to vector<8x8xbf16>
    %cst_21 = arith.constant dense<0.000000e+00> : vector<8x8xf32>
    %85 = tpu.matmul %84, %72, %cst_21 {dimension_numbers = #tpu.dot_dimension_numbers<[1], [0], [0], [1], [0, 0, 1, 1], [], []>} : vector<8x8xbf16>, vector<8x8xbf16>, vector<8x8xf32> -> vector<8x8xf32>
    %86 = tpu.concatenate %37, %53, %69, %85 in 1 : vector<8x8xf32>, vector<8x8xf32>, vector<8x8xf32>, vector<8x8xf32> -> vector<8x32xf32>
    %87 = arith.truncf %86 : vector<8x32xf32> to vector<8x32xbf16>
    %c0_22 = arith.constant 0 : index
    %c0_23 = arith.constant 0 : index
    %88 = vector.load %arg3[%c0_22, %c0_23] : memref<32x32xbf16, #tpu.memory_space<vmem>>, vector<32x32xbf16>
    %cst_24 = arith.constant dense<0.000000e+00> : vector<8x32xf32>
    %89 = tpu.matmul %87, %88, %cst_24 {dimension_numbers = #tpu.dot_dimension_numbers<[1], [0], [0], [1], [0, 0, 1, 1], [], []>} : vector<8x32xbf16>, vector<32x32xbf16>, vector<8x32xf32> -> vector<8x32xf32>
    %90 = vector.broadcast %4 : vector<1x32xf32> to vector<8x32xf32>
    %91 = arith.addf %89, %90 : vector<8x32xf32>
    %92 = arith.addf %1, %91 : vector<8x32xf32>
    %cst_25 = arith.constant dense<0.000000e+00> : vector<8xf32>
    %93 = vector.multi_reduction <add>, %92, %cst_25 [1] : vector<8x32xf32> to vector<8xf32>
    %94 = vector.shape_cast %93 : vector<8xf32> to vector<8x1xf32>
    %cst_26 = arith.constant 3.200000e+01 : f32
    %95 = vector.broadcast %cst_26 : f32 to vector<8x1xf32>
    %96 = arith.divf %94, %95 : vector<8x1xf32>
    %97 = vector.broadcast %96 : vector<8x1xf32> to vector<8x32xf32>
    %98 = arith.subf %92, %97 : vector<8x32xf32>
    %99 = arith.mulf %98, %98 : vector<8x32xf32>
    %cst_27 = arith.constant dense<0.000000e+00> : vector<8xf32>
    %100 = vector.multi_reduction <add>, %99, %cst_27 [1] : vector<8x32xf32> to vector<8xf32>
    %101 = vector.shape_cast %100 : vector<8xf32> to vector<8x1xf32>
    %cst_28 = arith.constant 3.200000e+01 : f32
    %102 = vector.broadcast %cst_28 : f32 to vector<8x1xf32>
    %103 = arith.divf %101, %102 : vector<8x1xf32>
    %104 = vector.broadcast %96 : vector<8x1xf32> to vector<8x32xf32>
    %105 = arith.subf %92, %104 : vector<8x32xf32>
    %cst_29 = arith.constant 9.99999974E-6 : f32
    %106 = vector.broadcast %cst_29 : f32 to vector<8x1xf32>
    %107 = arith.addf %103, %106 : vector<8x1xf32>
    %108 = math.rsqrt %107 : vector<8x1xf32>
    %109 = vector.broadcast %108 : vector<8x1xf32> to vector<8x32xf32>
    %110 = arith.mulf %105, %109 : vector<8x32xf32>
    %111 = vector.broadcast %7 : vector<1x32xf32> to vector<8x32xf32>
    %112 = arith.mulf %110, %111 : vector<8x32xf32>
    %113 = vector.broadcast %8 : vector<1x32xf32> to vector<8x32xf32>
    %114 = arith.addf %112, %113 : vector<8x32xf32>
    %115 = arith.truncf %114 : vector<8x32xf32> to vector<8x32xbf16>
    %c0_30 = arith.constant 0 : index
    %c0_31 = arith.constant 0 : index
    %116 = vector.load %arg4[%c0_30, %c0_31] : memref<32x64xbf16, #tpu.memory_space<vmem>>, vector<32x64xbf16>
    %cst_32 = arith.constant dense<0.000000e+00> : vector<8x64xf32>
    %117 = tpu.matmul %115, %116, %cst_32 {dimension_numbers = #tpu.dot_dimension_numbers<[1], [0], [0], [1], [0, 0, 1, 1], [], []>} : vector<8x32xbf16>, vector<32x64xbf16>, vector<8x64xf32> -> vector<8x64xf32>
    %118 = vector.broadcast %5 : vector<1x64xf32> to vector<8x64xf32>
    %119 = arith.addf %117, %118 : vector<8x64xf32>
    %cst_33 = arith.constant 0.000000e+00 : f32
    %120 = vector.broadcast %cst_33 : f32 to vector<8x64xf32>
    %121 = arith.maximumf %119, %120 : vector<8x64xf32>
    %122 = arith.truncf %121 : vector<8x64xf32> to vector<8x64xbf16>
    %c0_34 = arith.constant 0 : index
    %c0_35 = arith.constant 0 : index
    %123 = vector.load %arg5[%c0_34, %c0_35] : memref<64x32xbf16, #tpu.memory_space<vmem>>, vector<64x32xbf16>
    %cst_36 = arith.constant dense<0.000000e+00> : vector<8x32xf32>
    %124 = tpu.matmul %122, %123, %cst_36 {dimension_numbers = #tpu.dot_dimension_numbers<[1], [0], [0], [1], [0, 0, 1, 1], [], []>} : vector<8x64xbf16>, vector<64x32xbf16>, vector<8x32xf32> -> vector<8x32xf32>
    %125 = vector.broadcast %6 : vector<1x32xf32> to vector<8x32xf32>
    %126 = arith.addf %124, %125 : vector<8x32xf32>
    %127 = arith.addf %114, %126 : vector<8x32xf32>
    %cst_37 = arith.constant dense<0.000000e+00> : vector<8xf32>
    %128 = vector.multi_reduction <add>, %127, %cst_37 [1] : vector<8x32xf32> to vector<8xf32>
    %129 = vector.shape_cast %128 : vector<8xf32> to vector<8x1xf32>
    %cst_38 = arith.constant 3.200000e+01 : f32
    %130 = vector.broadcast %cst_38 : f32 to vector<8x1xf32>
    %131 = arith.divf %129, %130 : vector<8x1xf32>
    %132 = vector.broadcast %131 : vector<8x1xf32> to vector<8x32xf32>
    %133 = arith.subf %127, %132 : vector<8x32xf32>
    %134 = arith.mulf %133, %133 : vector<8x32xf32>
    %cst_39 = arith.constant dense<0.000000e+00> : vector<8xf32>
    %135 = vector.multi_reduction <add>, %134, %cst_39 [1] : vector<8x32xf32> to vector<8xf32>
    %136 = vector.shape_cast %135 : vector<8xf32> to vector<8x1xf32>
    %cst_40 = arith.constant 3.200000e+01 : f32
    %137 = vector.broadcast %cst_40 : f32 to vector<8x1xf32>
    %138 = arith.divf %136, %137 : vector<8x1xf32>
    %139 = vector.broadcast %131 : vector<8x1xf32> to vector<8x32xf32>
    %140 = arith.subf %127, %139 : vector<8x32xf32>
    %cst_41 = arith.constant 9.99999974E-6 : f32
    %141 = vector.broadcast %cst_41 : f32 to vector<8x1xf32>
    %142 = arith.addf %138, %141 : vector<8x1xf32>
    %143 = math.rsqrt %142 : vector<8x1xf32>
    %144 = vector.broadcast %143 : vector<8x1xf32> to vector<8x32xf32>
    %145 = arith.mulf %140, %144 : vector<8x32xf32>
    %146 = vector.broadcast %9 : vector<1x32xf32> to vector<8x32xf32>
    %147 = arith.mulf %145, %146 : vector<8x32xf32>
    %148 = vector.broadcast %10 : vector<1x32xf32> to vector<8x32xf32>
    %149 = arith.addf %147, %148 : vector<8x32xf32>
    %c0_42 = arith.constant 0 : index
    %c0_43 = arith.constant 0 : index
    %c0_44 = arith.constant 0 : index
    %150 = vector.load %arg7[%c0_42, %c0_43, %c0_44] : memref<1x8x32xf32, #tpu.memory_space<vmem>>, vector<1x8x32xf32>
    %151 = vector.shape_cast %150 : vector<1x8x32xf32> to vector<8x32xf32>
    %152 = vector.shape_cast %149 : vector<8x32xf32> to vector<1x8x32xf32>
    tpu.vector_store %arg7[%c0_42, %c0_43, %c0_44], %152 {strides = array<i32>} : memref<1x8x32xf32, #tpu.memory_space<vmem>>, vector<1x8x32xf32>,
    return
  }
  func.func @transform_0(%arg0: i32) -> (i32, i32, i32) {
    %c0_i32 = arith.constant 0 : i32
    %c0_i32_0 = arith.constant 0 : i32
    %c0_i32_1 = arith.constant 0 : i32
    return %arg0, %c0_i32, %c0_i32_0 : i32, i32, i32
  }
  func.func @transform_1(%arg0: i32) -> (i32, i32) {
    %c0_i32 = arith.constant 0 : i32
    %c0_i32_0 = arith.constant 0 : i32
    %c0_i32_1 = arith.constant 0 : i32
    return %c0_i32, %c0_i32_0 : i32, i32
  }
  func.func @transform_2(%arg0: i32) -> (i32, i32) {
    %c0_i32 = arith.constant 0 : i32
    %c0_i32_0 = arith.constant 0 : i32
    %c0_i32_1 = arith.constant 0 : i32
    return %c0_i32, %c0_i32_0 : i32, i32
  }
  func.func @transform_3(%arg0: i32) -> (i32, i32) {
    %c0_i32 = arith.constant 0 : i32
    %c0_i32_0 = arith.constant 0 : i32
    %c0_i32_1 = arith.constant 0 : i32
    return %c0_i32, %c0_i32_0 : i32, i32
  }
  func.func @transform_4(%arg0: i32) -> (i32, i32) {
    %c0_i32 = arith.constant 0 : i32
    %c0_i32_0 = arith.constant 0 : i32
    %c0_i32_1 = arith.constant 0 : i32
    return %c0_i32, %c0_i32_0 : i32, i32
  }
  func.func @transform_5(%arg0: i32) -> (i32, i32) {
    %c0_i32 = arith.constant 0 : i32
    %c0_i32_0 = arith.constant 0 : i32
    %c0_i32_1 = arith.constant 0 : i32
    return %c0_i32, %c0_i32_0 : i32, i32
  }
  func.func @transform_6(%arg0: i32) -> (i32, i32, i32) {
    %c0_i32 = arith.constant 0 : i32
    %c0_i32_0 = arith.constant 0 : i32
    %c0_i32_1 = arith.constant 0 : i32
    return %arg0, %c0_i32, %c0_i32_0 : i32, i32, i32
  }
}

</mosaic_0001>

<bundles_post_ra>
// kernel: tpu_custom_call.1
= control target key start
LH: loop header
LB: loop body
LE: loop exit
PB: predicated region body
PF: predicated region fallthrough
CT: control target
= control target key end

     0   :  { %11 = vsyncpa [#allocation3], 0  ;;  %s1807_s0 = inlined_call_operand.vmem [shape: f32[2,8,32], index: 0, kind: input, shape index: {}]   ;;  %s1808_s1 = inlined_call_operand.vmem [shape: bf16[32,96], index: 1, kind: input, shape index: {}]   ;;  %s1809_s2 = inlined_call_operand.vmem [shape: bf16[32,32], index: 2, kind: input, shape index: {}]   ;;  %s1810_s3 = inlined_call_operand.hbm [shape: bf16[32,64], index: 3, kind: input, shape index: {}]   ;;  %s1811_s4 = inlined_call_operand.vmem [shape: bf16[64,32], index: 4, kind: input, shape index: {}]   ;;  %s1812_s5 = inlined_call_operand.vmem [shape: f32[8,96], index: 5, kind: input, shape index: {}]   ;;  %s1813_s6 = inlined_call_operand.hbm [shape: f32[2,8,32], index: 6, kind: output, shape index: {}]  }
   0x1   :  { %12 = vsyncpa [#allocation4], 0 }
   0x2   :  { %14 = vsyncpa [#allocation4 + $0x1], 0  ;;  %s1531_s21 = smov 0   ;;  %s1533_s22 = smov 0  }
   0x3   :  { %s1535_s23 = smov 0   ;;  %s1537_s24 = smov 0  }
   0x4 LB: > { %s1552_s25 = sadd.s32 4294967295, %s1474_s24   ;;  %s1134_s26 = sadd.s32 4294967294, %s1474_s24   ;;  %s1474_s24 = sphi %s1537_s24, %s1829_s24   ;;  %s1470_s23 = sphi %s1535_s23, %s1828_s23   ;;  %s1466_s22 = sphi %s1533_s22, %s1827_s22   ;;  %s1462_s21 = sphi %s1531_s21, %s1826_s21  }
   0x5   : > { %s1556_s27 = sadd.s32 1, %s1474_s24   ;;  %s158_s28 = sadd.s32 1, %s1470_s23 }
   0x6   : > { %s155_s29 = ssub.s32 %s1474_s24, %s1556_s27  ;;  %p168_p0 = scmp.ne.s32.totalorder %s1470_s23, %s1466_s22 }
   0x7   : > { %p156_p1 = scmp.eq.s32.totalorder %s155_s29, 0  ;;  %p169_p2 = scmp.eq.s32.totalorder %s1552_s25, 1 }
   0x8   : > { %p174_p3 = scmp.ne.s32.totalorder %s1466_s22, %s1462_s21  ;;  %p175_p4 = scmp.eq.s32.totalorder %s1134_s26, 1 }
   0x9   : > { %s1567_s30 = scalar_select %p156_p1, %s1470_s23, %s158_s28  }
   0xa   : > { %p1569_p5 = por %p169_p2, %p168_p0  ;;  %p1573_p6 = por %p175_p4, %p174_p3 }
   0xb   : > { %p1135_p7 = scmp.ge.s32.totalorder %s1474_s24, 1  ;;  %p182_p8 = scmp.lt.s32.totalorder %s1474_s24, 3 }
   0xc   : > { %s1817_s7 = scalar_select %p1569_p5, 1, 0 }
   0xd   : > { %s1818_s8 = scalar_select %p1573_p6, 1, 0 }
   0xe   : > { %p1814_p9 = scmp.eq.s32.totalorder %s1552_s25, 0  ;;  %p1580_p10 = pnand %p1135_p7, %p182_p8 }
   0xf   : > { %s1476_s10 = smov [#allocation2]   ;;  %s1380_s15 = scalar_lea.hbm %s1810_s3, 256 }
  0x10   : > { %s1819_s9 = scalar_select %p1580_p10, 1, 0 }
  0x11   : > { %s200_s11 = sshll.u32 %s1476_s10, 4  ;;  %p1288_p11 = pneg %p1580_p10  ;;  %s201_s11 = int_to_ptr.vmem [resolvable:$true] %s200_s11 }
  0x12   : > { %p1381_p13 = scmp.ne.s32.totalorder %s1810_s3, %s1380_s15  ;;  %p1387_p3 = scmp.lt.u32.totalorder %s1380_s15, %s1810_s3 }
  0x13   : > { %p1588_p12 = pnand %p1814_p9, %p1288_p11 }
  0x15   : > { %p1382_p0 = pneg %p1588_p12 }
  0x17   : > { %p1383_p1 = pnand %p1382_p0, %p1381_p13 }
  0x19   : > { %p1384_p2 = pneg %p1383_p1 }
  0x1b   : > { %p1389_p4 = pnand %p1387_p3, %p1384_p2 }
  0x1d   : > { %1392 = shalt.err (!%p1389_p4)
}
  0x1e   : > { %s1393_s20 = scalar_lea.vmem %s201_s11, 256  ;;  %p1401_p9 = scmp.lt.s32.totalorder %s201_s11, %s201_s11 }
  0x1f   : > { %p1394_p7 = scmp.ne.s32.totalorder %s201_s11, %s1393_s20  ;;  %p1402_p6 = scmp.lt.s32.totalorder %s1393_s20, %s1393_s20 }
  0x21   : > { %p1396_p8 = pnand %p1394_p7, %p1382_p0  ;;  %p1403_p5 = por %p1402_p6, %p1401_p9 }
  0x23   : > { %p1397_p11 = pneg %p1396_p8 }
  0x25   : > { %p1404_p10 = pnand %p1403_p5, %p1397_p11 }
  0x27   : > { %1407 = shalt.err (!%p1404_p10)
}
  0x28   : > { %s1477_s26 = smov 64   ;;  %s1478_s28 = smov 4  }
  0x29   : > { %1291 = dma.hbm_to_vmem [thread:$0]  (!%p1588_p12), %s1810_s3, 256, %s201_s11, [#allocation3], %s1477_s26, %s1477_s26, %s1478_s28  }
  0x2a   : > { %p1821_p13 = scmp.ne.s32.totalorder %s1819_s9, 0 }
  0x2b   : > { %p1822_p1 = scmp.eq.s32.totalorder (!%p1821_p13), %s1552_s25, 0 }
  0x2c   : > { %229 = sbr.rel (%p1821_p13) target bundleno = 2613 (0xa35), region = 44 }
  0x33   : > { %1453 = dma.done.wait (%p1822_p1), [#allocation3], 256   ;;  %p1823_p0 = pmov %p1822_p1 }
  0x34   : > { %p258_p5 = scmp.lt.s32.totalorder %s1552_s25, 1  ;;  %v1479_v0 = vmov 0.0   ;;  %vm1480_vm0 = vmmov 0   ;;  %v1350_v1 = vld [vmem:[%s1808_s1] sm:$0xff]   ;;  %v1351_v2 = vld [vmem:[%s1808_s1 + $0x8] sm:$0xff]   ;;  %vm286_vm1 = vcmask 261120   ;;  %v270_v5 = vlaneseq }
  0x35   : > { %1455 = vsyncadd (%p1823_p0), [#allocation3], 4294967040  ;;  %1198 = vmatprep.subr.bf16.mxu0 %v1479_v0  ;;  %1202 = vmatprep.mubr.msk.bf16.mxu0 %vm1480_vm0, %v1479_v0  ;;  %v1646_v8 = vld [vmem:[%s1812_s5] sm:$0xff]  ;;  %s1481_s26 = smov 120   ;;  %s1482_s28 = smov 96   ;;  %vm334_vm2 = vcmask 64512  }
  0x36   : > { %s259_s11 = scalar_select %p258_p5, %s1552_s25, 1  ;;  %1206 = vmatprep.subr.bf16.mxu1 %v1479_v0  ;;  %1208 = vmatprep.mubr.msk.bf16.mxu1 %vm1480_vm0, %v1479_v0  ;;  %v1640_v6 = vshrl.u32 %v270_v5, 7  ;;  %vm398_vm3 = vcmask 1043456   ;;  %vm785_vm4 = vcmask 130048   ;;  %vm787_vm5 = vcmask 195584  }
  0x37   : > { %1199 = vmatpush3.bf16.msra.mxu0 %v1350_v1  ;;  %s1483_s29 = smov 80   ;;  %s1484_s10 = smov 88   ;;  %vm980_vm6 = vcmask 523264  }
  0x38   : > { %s1141_s9 = sshll.u32 %s259_s11, 3  ;;  %1200 = vmatprep.subr.bf16.mxu0 %v1479_v0  ;;  %v272_v7 = vsub.s32 0, %v1640_v6  ;;  %s1485_s11 = smov 72  }
  0x39   : > { %s261_s14 = scalar_lea.vmem %s1807_s0, %s1141_s9  ;;  %s1486_s9 = smov 112  }
  0x3a   : > { %v1631_v3 = vld [vmem:[%s261_s14] sm:$0xff]  ;;  %v273_v9 = vrot.slane %v1646_v8, %v272_v7  ;;  %s1487_s12 = smov 104   ;;  %s1488_s13 = smov 56  }
  0x3b   : > { %v265_v4 = vpack.c.bf16 %v1631_v3, %v1631_v3  ;;  %1201 = vmatpush3.bf16.msra.mxu0 %v1351_v2  ;;  %s1489_s14 = smov 64   ;;  %s1490_s15 = smov 40  }
  0x3c   : > { %1212 = vmatprep.subr.bf16.mxu0 %v1479_v0  ;;  %s1491_s16 = smov 48   ;;  %s1492_s17 = smov 8  }
  0x3d   : > { %s1165_s19 = sshll.u32 %s1552_s25, 7  ;;  %p1824_p9 = scmp.ne.s32.totalorder %s1817_s7, 0 }
  0x3e   : > { %1203 = vmatmul.mubr.msk.bf16.vlgmr.msra.gmra.mrb[0].mxu0 %vm286_vm1, %v265_v4  ;;  %s1495_s25 = smov [#allocation5]  }
  0x3f   : > { %1214 = vmatprep.mubr.msk.bf16.mxu0 %vm1480_vm0, %v1479_v0 }
 0x111   : > { %v324_v10 = vpop.f32.mrb[0].mxu0 }
 0x112   : > { %v325_v11 = vadd.f32 %v324_v10, %v273_v9  ;;  %v1204_v12 = vpop.f32.mrb[1].mxu0 }
 0x113   : > { %v327_v13 = vpop.f32.mrb[2].mxu0 }
 0x114   : > { %v1649_v14 = vpack.c.bf16 %v325_v11, %v325_v11  ;;  %v1205_v15 = vpop.f32.mrb[3].mxu0 }
 0x116   : > { %442 = vrot.lane.b32.xlu1 %v1649_v14, %s1481_s26  ;;  %332 = vrot.lane.b32.xlu0 %v1649_v14, %s1482_s28  ;;  %s1493_s28 = smov 16  }
 0x11a   : > { %554 = vrot.lane.b32.xlu1 %v1649_v14, %s1483_s29  ;;  %444 = vrot.lane.b32.xlu0 %v1649_v14, %s1484_s10  ;;  %s1494_s29 = smov 24   ;;  %s1764_s10 = scalar_lea.hbm %s1813_s6, %s1165_s19 }
 0x11e   : > { %664 = vrot.lane.b32.xlu1 %v1649_v14, %s1485_s11  ;;  %552 = vrot.lane.b32.xlu0 %v1649_v14, %s1486_s9 }
 0x122   : > { %662 = vrot.lane.b32.xlu0 %v1649_v14, %s1487_s12  ;;  %s1412_s12 = sshll.u32 %s1495_s25, 4  ;;  %s1413_s12 = int_to_ptr.vmem [resolvable:$false] %s1412_s12 }
 0x188   : > { %v333_v16 = vpop.permute.xlu0 %332  ;;  %v443_v19 = vpop.permute.xlu1 %442 }
 0x189   : > { %v339_v17 = vsel %vm334_vm2, %v333_v16, 0 }
 0x18a   : > { %1207 = vmatpush3.bf16.xpose.msra.mxu1 %v339_v17 }
 0x18b   : > { %1218 = vmatprep.subr.bf16.mxu1 %v1479_v0 }
 0x18c   : > { %v445_v18 = vpop.permute.xlu0 %444  ;;  %v555_v21 = vpop.permute.xlu1 %554 }
 0x18d   : > { %v450_v20 = vsel %vm334_vm2, %v445_v18, 0  ;;  %v560_v22 = vsel %vm334_vm2, %v555_v21, 0 }
 0x190   : > { %v665_v23 = vpop.permute.xlu1 %664  ;;  %v553_v24 = vpop.permute.xlu0 %552 }
 0x191   : > { %1209 = vmatmul.mubr.msk.bf16.vlgmr.msra.gmra.mrb[0].mxu1 %vm334_vm2, %v1649_v14  ;;  %v670_v25 = vsel %vm334_vm2, %v665_v23, 0 }
 0x192   : > { %1219 = vmatpush3.bf16.xpose.msra.mxu1 %v450_v20  ;;  %1220 = vmatprep.mubr.msk.bf16.mxu1 %vm1480_vm0, %v1479_v0 }
 0x193   : > { %1230 = vmatprep.subr.bf16.mxu1 %v1479_v0 }
 0x194   : > { %v663_v26 = vpop.permute.xlu0 %662 }
 0x199   : > { %1221 = vmatmul.mubr.msk.bf16.vlgmr.msra.gmra.mrb[4].mxu1 %vm334_vm2, %v443_v19 }
 0x19a   : > { %1231 = vmatpush3.bf16.xpose.msra.mxu1 %v560_v22  ;;  %1232 = vmatprep.mubr.msk.bf16.mxu1 %vm1480_vm0, %v1479_v0 }
 0x19b   : > { %1242 = vmatprep.subr.bf16.mxu1 %v1479_v0 }
 0x1a1   : > { %1233 = vmatmul.mubr.msk.bf16.vlgmr.msra.gmra.mrb[8].mxu1 %vm334_vm2, %v553_v24 }
 0x1a2   : > { %1243 = vmatpush3.bf16.xpose.msra.mxu1 %v670_v25  ;;  %1244 = vmatprep.mubr.msk.bf16.mxu1 %vm1480_vm0, %v1479_v0 }
 0x1a3   : > { %1254 = vmatprep.subr.bf16.mxu1 %v1479_v0 }
 0x1a9   : > { %1245 = vmatmul.mubr.msk.bf16.vlgmr.msra.gmra.mrb[12].mxu1 %vm334_vm2, %v663_v26 }
 0x1aa   : > { %1258 = vmatprep.mubr.msk.bf16.mxu1 %vm1480_vm0, %v1479_v0 }
 0x264   : > { %v375_v27 = vpop.f32.mrb[0].mxu1 }
 0x265   : > { %v1210_v28 = vpop.f32.mrb[1].mxu1  ;;  %v381_v29 = vsel %vm334_vm2, %v375_v27, -inf }
 0x266   : > { %382 = vmax.xlane.f32.xlu1 %v381_v29  ;;  %v378_v30 = vpop.f32.mrb[2].mxu1 }
 0x267   : > { %v1211_v31 = vpop.f32.mrb[3].mxu1 }
 0x26c   : > { %v486_v32 = vpop.f32.mrb[4].mxu1 }
 0x26d   : > { %v1222_v33 = vpop.f32.mrb[5].mxu1  ;;  %v492_v34 = vsel %vm334_vm2, %v486_v32, -inf }
 0x26e   : > { %493 = vmax.xlane.f32.xlu0 %v492_v34  ;;  %v489_v35 = vpop.f32.mrb[6].mxu1 }
 0x26f   : > { %v1223_v36 = vpop.f32.mrb[7].mxu1 }
 0x274   : > { %v596_v37 = vpop.f32.mrb[8].mxu1 }
 0x275   : > { %v1234_v38 = vpop.f32.mrb[9].mxu1  ;;  %v602_v39 = vsel %vm334_vm2, %v596_v37, -inf }
 0x276   : > { %603 = vmax.xlane.f32.xlu0 %v602_v39  ;;  %v599_v40 = vpop.f32.mrb[10].mxu1  ;;  %v1352_v39 = vld [vmem:[%s1809_s2] sm:$0xff]  }
 0x277   : > { %v1235_v41 = vpop.f32.mrb[11].mxu1  ;;  %1255 = vmatpush3.bf16.msra.mxu1 %v1352_v39  ;;  %v1353_v40 = vld [vmem:[%s1809_s2 + $0x8] sm:$0xff]  }
 0x278   : > { %1256 = vmatprep.subr.bf16.mxu1 %v1479_v0 }
 0x27b   : > { %1257 = vmatpush3.bf16.msra.mxu1 %v1353_v40 }
 0x27c   : > { %v706_v42 = vpop.f32.mrb[12].mxu1  ;;  %1270 = vmatprep.subr.bf16.mxu1 %v1479_v0 }
 0x27d   : > { %v1246_v43 = vpop.f32.mrb[13].mxu1  ;;  %v712_v44 = vsel %vm334_vm2, %v706_v42, -inf }
 0x27e   : > { %713 = vmax.xlane.f32.xlu1 %v712_v44  ;;  %v709_v45 = vpop.f32.mrb[14].mxu1 }
 0x27f   : > { %v1247_v46 = vpop.f32.mrb[15].mxu1 }
 0x2f3   : > { %v383_v47 = vpop.xlane.xlu1 %382 }
 0x2f4   : > { %v384_v48 = vsub.f32 %v375_v27, %v383_v47 }
 0x2f6   : > { %v385_v49 = vmul.f32 1.442695, %v384_v48 }
 0x2f8   : > { %1360 = vpow2.f32 %v385_v49 }
 0x2fb   : > { %v494_v50 = vpop.xlane.xlu0 %493 }
 0x2fc   : > { %v495_v51 = vsub.f32 %v486_v32, %v494_v50 }
 0x2fe   : > { %v496_v52 = vmul.f32 1.442695, %v495_v51 }
 0x300   : > { %1362 = vpow2.f32 %v496_v52 }
 0x302   : > { %v1361_v53 = vpop.eup %1360 }
 0x303   : > { %v604_v54 = vpop.xlane.xlu0 %603  ;;  %v387_v55 = vsel %vm334_vm2, %v1361_v53, 0.0 }
 0x304   : > { %v605_v56 = vsub.f32 %v596_v37, %v604_v54  ;;  %388 = vadd.xlane.f32.xlu0 %v387_v55 }
 0x306   : > { %v606_v57 = vmul.f32 1.442695, %v605_v56  ;;  %v796_v56 = vsub.s32 1, %v1640_v6 }
 0x308   : > { %1364 = vpow2.f32 %v606_v57  ;;  %v797_v57 = vrot.slane %v1646_v8, %v796_v56 }
 0x30a   : > { %v1363_v58 = vpop.eup %1362 }
 0x30b   : > { %v498_v59 = vsel %vm334_vm2, %v1363_v58, 0.0  ;;  %v714_v62 = vpop.xlane.xlu1 %713 }
 0x30c   : > { %499 = vadd.xlane.f32.xlu1 %v498_v59  ;;  %v715_v63 = vsub.f32 %v706_v42, %v714_v62 }
 0x30e   : > { %v716_v1 = vmul.f32 1.442695, %v715_v63 }
 0x310   : > { %1366 = vpow2.f32 %v716_v1 }
 0x312   : > { %v1365_v60 = vpop.eup %1364 }
 0x313   : > { %v608_v61 = vsel %vm334_vm2, %v1365_v60, 0.0 }
 0x314   : > { %609 = vadd.xlane.f32.xlu0 %v608_v61 }
 0x31a   : > { %v1367_v2 = vpop.eup %1366 }
 0x31b   : > { %v718_v4 = vsel %vm334_vm2, %v1367_v2, 0.0 }
 0x31d   : > { %504 = vrot.lane.b32.xlu1 %v1649_v14, %s1488_s13  ;;  %s1414_s13 = scalar_lea.vmem %s1413_s12, 256 }
 0x32a   : > { %393 = vrot.lane.b32.xlu0 %v1649_v14, %s1489_s14 }
 0x32e   : > { %724 = vrot.lane.b32.xlu0 %v1649_v14, %s1490_s15 }
 0x341   : > { %719 = vadd.xlane.f32.xlu1 %v718_v4 }
 0x352   : > { %614 = vrot.lane.b32.xlu1 %v1649_v14, %s1491_s16 }
 0x391   : > { %v389_v5 = vpop.xlane.xlu0 %388 }
 0x392   : > { %1368 = vrcp.f32 %v389_v5 }
 0x399   : > { %v500_v7 = vpop.xlane.xlu1 %499 }
 0x39a   : > { %1370 = vrcp.f32 %v500_v7 }
 0x39c   : > { %v1369_v9 = vpop.eup %1368 }
 0x39d   : > { %v391_v11 = vmul.f32 %v1369_v9, %v1361_v53  ;;  %v505_v15 = vpop.permute.xlu1 %504 }
 0x39e   : > { %v510_v18 = vsel %vm398_vm3, %v505_v15, 0 }
 0x39f   : > { %v392_v16 = vpack.c.bf16 %v391_v11, %v391_v11  ;;  %v1355_v11 = vld [vmem:[#allocation2 + $0x8] sm:$0xff]  }
 0x3a1   : > { %v610_v10 = vpop.xlane.xlu0 %609 }
 0x3a2   : > { %1372 = vrcp.f32 %v610_v10  ;;  %v1354_v10 = vld [vmem:[#allocation2] sm:$0xff]  }
 0x3a4   : > { %v1371_v17 = vpop.eup %1370 }
 0x3a5   : > { %v394_v12 = vpop.permute.xlu0 %393  ;;  %v502_v14 = vmul.f32 %v1371_v17, %v1363_v58  ;;  %v870_v17 = vsub.s32 4, %v1640_v6 }
 0x3a6   : > { %v400_v13 = vsel %vm398_vm3, %v394_v12, 0  ;;  %v1357_v12 = vld [vmem:[%s1811_s4 + $0x8] sm:$0xff]  }
 0x3a7   : > { %1213 = vmatpush3.bf16.msra.mxu0 %v400_v13  ;;  %v503_v19 = vpack.c.bf16 %v502_v14, %v502_v14  ;;  %v871_v14 = vrot.slane %v1646_v8, %v870_v17 }
 0x3a8   : > { %1224 = vmatprep.subr.bf16.mxu0 %v1479_v0 }
 0x3a9   : > { %v725_v25 = vpop.permute.xlu0 %724 }
 0x3aa   : > { %1215 = vmatmul.mubr.msk.bf16.vlgmr.msra.gmra.mrb[4].mxu0 %vm334_vm2, %v392_v16  ;;  %v730_v27 = vsel %vm398_vm3, %v725_v25, 0  ;;  %v1358_v25 = vld [vmem:[%s1811_s4 + $0x10] sm:$0xff]  }
 0x3ab   : > { %1225 = vmatpush3.bf16.msra.mxu0 %v510_v18  ;;  %1226 = vmatprep.mubr.msk.bf16.mxu0 %vm1480_vm0, %v1479_v0  ;;  %v875_v18 = vsub.s32 5, %v1640_v6 }
 0x3ac   : > { %1236 = vmatprep.subr.bf16.mxu0 %v1479_v0  ;;  %v1373_v20 = vpop.eup %1372 }
 0x3ad   : > { %v612_v22 = vmul.f32 %v1373_v20, %v1365_v60 }
 0x3af   : > { %v613_v26 = vpack.c.bf16 %v612_v22, %v612_v22 }
 0x3b2   : > { %1227 = vmatmul.mubr.msk.bf16.vlgmr.msra.gmra.mrb[8].mxu0 %vm334_vm2, %v503_v19 }
 0x3b3   : > { %1238 = vmatprep.mubr.msk.bf16.mxu0 %vm1480_vm0, %v1479_v0 }
 0x3ce   : > { %v720_v21 = vpop.xlane.xlu1 %719 }
 0x3cf   : > { %1374 = vrcp.f32 %v720_v21  ;;  %v876_v21 = vrot.slane %v1646_v8, %v875_v18 }
 0x3d2   : > { %v615_v23 = vpop.permute.xlu1 %614 }
 0x3d3   : > { %v620_v24 = vsel %vm398_vm3, %v615_v23, 0 }
 0x3d4   : > { %1237 = vmatpush3.bf16.msra.mxu0 %v620_v24 }
 0x3d5   : > { %1248 = vmatprep.subr.bf16.mxu0 %v1479_v0 }
 0x3d7   : > { %1239 = vmatmul.mubr.msk.bf16.vlgmr.msra.gmra.mrb[12].mxu0 %vm334_vm2, %v613_v26  ;;  %v1359_v26 = vld [vmem:[%s1811_s4 + $0x18] sm:$0xff]  }
 0x3d8   : > { %1249 = vmatpush3.bf16.msra.mxu0 %v730_v27  ;;  %1250 = vmatprep.mubr.msk.bf16.mxu0 %vm1480_vm0, %v1479_v0  ;;  %v885_v27 = vsub.s32 2, %v1640_v6 }
 0x3d9   : > { %v1375_v28 = vpop.eup %1374  ;;  %1262 = vmatprep.subr.bf16.mxu0 %v1479_v0 }
 0x3da   : > { %v722_v29 = vmul.f32 %v1375_v28, %v1367_v2  ;;  %v886_v28 = vrot.slane %v1646_v8, %v885_v27 }
 0x3dc   : > { %v723_v30 = vpack.c.bf16 %v722_v29, %v722_v29 }
 0x3df   : > { %1251 = vmatmul.mubr.msk.bf16.vlgmr.msra.gmra.mrb[16].mxu0 %vm334_vm2, %v723_v30 }
 0x3e0   : > { %1266 = vmatprep.mubr.msk.bf16.mxu0 %vm1480_vm0, %v1479_v0  ;;  %1263 = vmatpush3.bf16.msra.mxu0 %v1354_v10 }
 0x3e1   : > { %1264 = vmatprep.subr.bf16.mxu0 %v1479_v0 }
 0x3e4   : > { %1265 = vmatpush3.bf16.msra.mxu0 %v1355_v11 }
 0x47d   : > { %v436_v31 = vpop.f32.mrb[4].mxu0 }
 0x47e   : > { %v1216_v32 = vpop.f32.mrb[5].mxu0 }
 0x47f   : > { %v439_v33 = vpop.f32.mrb[6].mxu0 }
 0x480   : > { %v1217_v34 = vpop.f32.mrb[7].mxu0 }
 0x485   : > { %v546_v35 = vpop.f32.mrb[8].mxu0 }
 0x486   : > { %773 = vrot.lane.b32.xlu1 %v546_v35, %s1492_s17  ;;  %v1228_v36 = vpop.f32.mrb[9].mxu0  ;;  %s255_s17 = sand.u32 1, %s1466_s22  }
 0x487   : > { %v549_v37 = vpop.f32.mrb[10].mxu0  ;;  %s1140_s18 = sshll.u32 %s255_s17, 3  ;;  %s1050_s11 = scalar_lea.sflag [#allocation4], %s255_s17 }
 0x488   : > { %v1229_v38 = vpop.f32.mrb[11].mxu0  ;;  %s257_s20 = scalar_lea.vmem [#allocation5], %s1140_s18 }
 0x489   : > { %s1063_s26 = sshll.u32 %s257_s20, 4  ;;  %s1766_s26 = int_to_ptr.vmem [resolvable:$true] %s1063_s26 }
 0x48a   : > { %s1408_s9 = scalar_lea.vmem %s1766_s26, 128  ;;  %p1415_p2 = scmp.lt.s32.totalorder %s1766_s26, %s1413_s12 }
 0x48b   : > { %p1409_p6 = scmp.ne.s32.totalorder %s1766_s26, %s1408_s9  ;;  %p1416_p3 = scmp.lt.s32.totalorder %s1414_s13, %s1408_s9 }
 0x48d   : > { %p1410_p10 = pnand %p1409_p6, %p1824_p9  ;;  %p1417_p4 = por %p1416_p3, %p1415_p2 }
 0x48f   : > { %p1411_p12 = pneg %p1410_p10 }
 0x491   : > { %p1418_p7 = pnand %p1417_p4, %p1411_p12 }
 0x4aa   : > { %v656_v41 = vpop.f32.mrb[12].mxu0 }
 0x4ab   : > { %777 = vrot.lane.b32.xlu0 %v656_v41, %s1493_s28  ;;  %v1240_v42 = vpop.f32.mrb[13].mxu0 }
 0x4ac   : > { %v659_v43 = vpop.f32.mrb[14].mxu0 }
 0x4ad   : > { %v1241_v44 = vpop.f32.mrb[15].mxu0 }
 0x4b2   : > { %v766_v45 = vpop.f32.mrb[16].mxu0 }
 0x4b3   : > { %781 = vrot.lane.b32.xlu1 %v766_v45, %s1494_s29  ;;  %v1252_v46 = vpop.f32.mrb[17].mxu0 }
 0x4b4   : > { %v769_v47 = vpop.f32.mrb[18].mxu0 }
 0x4b5   : > { %v1253_v48 = vpop.f32.mrb[19].mxu0 }
 0x4f8   : > { %v774_v49 = vpop.permute.xlu1 %773 }
 0x4f9   : > { %v784_v51 = vsel %vm334_vm2, %v436_v31, %v774_v49 }
 0x51d   : > { %v778_v50 = vpop.permute.xlu0 %777 }
 0x51e   : > { %v786_v52 = vsel %vm785_vm4, %v784_v51, %v778_v50 }
 0x525   : > { %v782_v53 = vpop.permute.xlu1 %781 }
 0x526   : > { %v788_v54 = vsel %vm787_vm5, %v786_v52, %v782_v53  ;;  %v1040_v52 = vsub.s32 6, %v1640_v6  ;;  %v1045_v53 = vsub.s32 7, %v1640_v6 }
 0x527   : > { %v789_v55 = vpack.c.bf16 %v788_v54, %v788_v54 }
 0x528   : > { %v1041_v54 = vrot.slane %v1646_v8, %v1040_v52 }
 0x529   : > { %1259 = vmatmul.mubr.msk.bf16.vlgmr.msra.gmra.mrb[16].mxu1 %vm286_vm1, %v789_v55 }
 0x52a   : > { %1278 = vmatprep.mubr.msk.bf16.mxu1 %vm1480_vm0, %v1479_v0 }
 0x5fc   : > { %v847_v58 = vpop.f32.mrb[16].mxu1 }
 0x5fd   : > { %v848_v59 = vadd.f32 %v847_v58, %v797_v57  ;;  %v1260_v60 = vpop.f32.mrb[17].mxu1  ;;  %v1046_v57 = vrot.slane %v1646_v8, %v1045_v53 }
 0x5fe   : > { %v850_v61 = vpop.f32.mrb[18].mxu1 }
 0x5ff   : > { %v1261_v62 = vpop.f32.mrb[19].mxu1  ;;  %v853_v63 = vadd.f32 %v848_v59, %v1631_v3  ;;  %v1356_v3 = vld [vmem:[%s1811_s4] sm:$0xff]  }
 0x600   : > { %1271 = vmatpush3.bf16.msra.mxu1 %v1356_v3 }
 0x601   : > { %v854_v1 = vsel %vm286_vm1, %v853_v63, 0.0  ;;  %1272 = vmatprep.subr.bf16.mxu1 %v1479_v0 }
 0x602   : > { %855 = vadd.xlane.f32.xlu0 %v854_v1 }
 0x604   : > { %1273 = vmatpush3.bf16.msra.mxu1 %v1357_v12 }
 0x605   : > { %1274 = vmatprep.subr.bf16.mxu1 %v1479_v0 }
 0x608   : > { %1275 = vmatpush3.bf16.msra.mxu1 %v1358_v25 }
 0x609   : > { %1276 = vmatprep.subr.bf16.mxu1 %v1479_v0  ;;  %v954_v0 = vsub.s32 3, %v1640_v6 }
 0x60b   : > { %v955_v36 = vrot.slane %v1646_v8, %v954_v0 }
 0x60c   : > { %1277 = vmatpush3.bf16.msra.mxu1 %v1359_v26 }
 0x68f   : > { %v856_v2 = vpop.xlane.xlu0 %855 }
 0x690   : > { %v858_v4 = vmul.f32 0.03125, %v856_v2 }
 0x692   : > { %v859_v5 = vsub.f32 %v853_v63, %v858_v4 }
 0x694   : > { %v860_v7 = vmul.f32 %v859_v5, %v859_v5 }
 0x696   : > { %v861_v9 = vsel %vm286_vm1, %v860_v7, 0.0 }
 0x697   : > { %862 = vadd.xlane.f32.xlu1 %v861_v9 }
 0x724   : > { %v863_v13 = vpop.xlane.xlu1 %862 }
 0x725   : > { %v864_v15 = vmul.f32 0.03125, %v863_v13 }
 0x727   : > { %v865_v16 = vadd.f32 1e-05, %v864_v15 }
 0x729   : > { %1376 = vrsqrt.f32 %v865_v16 }
 0x733   : > { %v1377_v19 = vpop.eup %1376 }
 0x734   : > { %v867_v20 = vmul.f32 %v1377_v19, %v859_v5 }
 0x736   : > { %v872_v22 = vmul.f32 %v871_v14, %v867_v20 }
 0x738   : > { %v877_v23 = vadd.f32 %v876_v21, %v872_v22 }
 0x73a   : > { %v878_v24 = vpack.c.bf16 %v877_v23, %v877_v23 }
 0x73c   : > { %1267 = vmatmul.mubr.msk.bf16.vlgmr.msra.gmra.mrb[20].mxu0 %vm286_vm1, %v878_v24 }
 0x80f   : > { %v936_v29 = vpop.f32.mrb[20].mxu0 }
 0x810   : > { %v937_v30 = vadd.f32 %v936_v29, %v886_v28  ;;  %v1268_v31 = vpop.f32.mrb[21].mxu0 }
 0x811   : > { %v939_v32 = vpop.f32.mrb[22].mxu0 }
 0x812   : > { %v942_v33 = vmax.f32 %v937_v30, 0.0  ;;  %v1269_v34 = vpop.f32.mrb[23].mxu0 }
 0x814   : > { %v943_v35 = vpack.c.bf16 %v942_v33, %v942_v33 }
 0x816   : > { %1279 = vmatmul.mubr.msk.bf16.vlgmr.msra.gmra.mrb[20].mxu1 %vm980_vm6, %v943_v35 }
 0x8e9   : > { %v1018_v37 = vpop.f32.mrb[20].mxu1 }
 0x8ea   : > { %v1019_v38 = vadd.f32 %v1018_v37, %v955_v36  ;;  %v1280_v39 = vpop.f32.mrb[21].mxu1 }
 0x8eb   : > { %v1021_v40 = vpop.f32.mrb[22].mxu1 }
 0x8ec   : > { %v1281_v41 = vpop.f32.mrb[23].mxu1  ;;  %v1024_v42 = vadd.f32 %v1019_v38, %v877_v23 }
 0x8ee   : > { %v1025_v43 = vsel %vm286_vm1, %v1024_v42, 0.0 }
 0x8ef   : > { %1026 = vadd.xlane.f32.xlu0 %v1025_v43 }
 0x97c   : > { %v1027_v44 = vpop.xlane.xlu0 %1026 }
 0x97d   : > { %v1028_v45 = vmul.f32 0.03125, %v1027_v44 }
 0x97f   : > { %v1029_v46 = vsub.f32 %v1024_v42, %v1028_v45 }
 0x981   : > { %v1030_v47 = vmul.f32 %v1029_v46, %v1029_v46 }
 0x983   : > { %v1031_v48 = vsel %vm286_vm1, %v1030_v47, 0.0 }
 0x984   : > { %1032 = vadd.xlane.f32.xlu0 %v1031_v48 }
 0xa11   : > { %v1033_v49 = vpop.xlane.xlu0 %1032 }
 0xa12   : > { %v1034_v50 = vmul.f32 0.03125, %v1033_v49 }
 0xa14   : > { %v1035_v51 = vadd.f32 1e-05, %v1034_v50 }
 0xa16   : > { %1378 = vrsqrt.f32 %v1035_v51 }
 0xa20   : > { %v1379_v55 = vpop.eup %1378 }
 0xa21   : > { %v1037_v56 = vmul.f32 %v1379_v55, %v1029_v46 }
 0xa23   : > { %v1042_v58 = vmul.f32 %v1041_v54, %v1037_v56 }
 0xa25   : > { %v1047_v59 = vadd.f32 %v1046_v57, %v1042_v58 }
 0xa27   : > { %1048 = vst.msk [vmem:[%s257_s20] sm:$0xff] %vm286_vm1, %v1047_v59 }
 0xa28   : > { %1421 = shalt.err (!%p1418_p7)
}
 0xa29   : > { %s1422_s14 = scalar_lea.hbm %s1764_s10, 128  ;;  %s1426_s17 = scalar_lea.hbm %s1813_s6, 256 }
 0xa2a   : > { %p1423_p8 = scmp.ne.s32.totalorder %s1764_s10, %s1422_s14  ;;  %p1427_p1 = scmp.lt.u32.totalorder %s1764_s10, %s1813_s6 }
 0xa2b   : > { %p1428_p0 = scmp.lt.u32.totalorder %s1426_s17, %s1422_s14  ;;  %p1430_p6 = scmp.lt.u32.totalorder %s1422_s14, %s1764_s10 }
 0xa2c   : > { %p1424_p11 = pnand %p1423_p8, %p1824_p9 }
 0xa2d   : > { %p1429_p5 = por %p1428_p0, %p1427_p1 }
 0xa2e   : > { %p1425_p13 = pneg %p1424_p11 }
 0xa2f   : > { %p1431_p10 = por %p1430_p6, %p1429_p5 }
 0xa31   : > { %p1432_p12 = pnand %p1431_p10, %p1425_p13 }
 0xa33   : > { %1435 = shalt.err (!%p1432_p12)
}
 0xa34   : > { %1286 = dma.vmem_to_hbm [thread:$0]  (%p1824_p9), %s1766_s26, 128, %s1764_s10, %s1050_s11  }
 0xa35 PF: > { %p1298_p2 = scmp.ge.s32.totalorder %s1474_s24, 2  ;;  %s1075_s20 = sand.u32 1, %s1462_s21  }
 0xa36   : > { %p1825_p3 = scmp.ne.s32.totalorder %s1818_s8, 0  ;;  %s1076_s28 = scalar_lea.sflag [#allocation4], %s1075_s20 }
 0xa38   : > { %p1293_p4 = pnand %p1298_p2, %p1825_p3 }
 0xa3a   : > { %1457 = dma.done.wait (!%p1293_p4), %s1076_s28, 128  }
 0xa3b   : > { %1459 = vsyncadd (!%p1293_p4), %s1076_s28, 4294967168  ;;  %p17_p7 = scmp.ge.s32.totalorder %s1556_s27, 4   ;;  %s1826_s21 = smov %s1466_s22 }
 0xa3c   : > { %s1827_s22 = smov %s1470_s23  ;;  %s1828_s23 = smov %s1567_s30 }
 0xa3d   : > { %s1829_s24 = smov %s1556_s27  ;;  %19 = sbr.rel (!%p17_p7) target bundleno = 4 (0x4), region = 84 }
 0xa44   :  { %1081 = vsyncpa [#allocation3], 1 }
 0xa45   :  { %1083 = vsyncpa [#allocation3 + $0x1], 1 }
 0xa46   :  { %1084 = vsyncpa [#allocation4], 1 }
 0xa47   :  { %1086 = vsyncpa [#allocation4 + $0x1], 1 }

</bundles_post_ra>
